<compile_context>
chip_gen: v7x
topology: tpu7x:2x2x1
jax: 0.10.0
libtpu: 0.0.40
codegen_flags: <defaults>
</compile_context>

<pallas_src>
import functools
import math

import jax
import jax.numpy as jnp
import numpy as np
from jax.experimental import pallas as pl
from jax.experimental.pallas import tpu as pltpu

_LANES = 128
_SUB_ROWS = 8                      # (8, 128) sub-chunk = one f32 vreg per plane
_MIN_TILE = _SUB_ROWS * _LANES     # 1024 boxes


def _recip(x):
    """Approx EUP reciprocal + one Newton step (~f32 accuracy)."""
    r = pl.reciprocal(x, approx=True)
    return r * (2.0 - x * r)


def _atan_f32(x):
    """Cephes-style float32 arctan (branchless), one reciprocal, ~1e-7 acc."""
    sign = jnp.where(x < 0.0, -1.0, 1.0)
    ax = jnp.abs(x)
    big = ax > 2.414213562373095     # tan(3*pi/8)
    mid = ax > 0.4142135623730951    # tan(pi/8)
    num = jnp.where(big, -1.0, ax - 1.0)
    den = jnp.where(big, ax, ax + 1.0)
    xr = jnp.where(mid, num * _recip(den), ax)
    z = xr * xr
    p = ((((8.05374449538e-2 * z - 1.38776856032e-1) * z + 1.99777106478e-1) * z
          - 3.33329491539e-1) * z * xr + xr)
    base = jnp.where(big, math.pi / 2.0, jnp.where(mid, math.pi / 4.0, 0.0))
    return sign * (base + p)


def _iou_loss_kernel(pred_ref, tgt_ref, *out_refs, iou_mode, bbox_format, eps,
                     tile_rows, write_iou):
    """One grid step: tile_rows*128 boxes.

    pred_ref/tgt_ref : (4, tile_rows, 128) f32  -- coordinate planes
    out_refs         : [iou_ref (tile_rows,128)] + [ploss_ref (1,8,128)]
                       (iou_ref only present when write_iou)
    """
    if write_iou:
        iou_ref, ploss_ref = out_refs
    else:
        (ploss_ref,) = out_refs

    n_inner = tile_rows // _SUB_ROWS

    def body(j, acc):
        r0 = pl.multiple_of(j * _SUB_ROWS, _SUB_ROWS)
        p0 = pred_ref[0, pl.ds(r0, _SUB_ROWS), :]
        p1 = pred_ref[1, pl.ds(r0, _SUB_ROWS), :]
        p2 = pred_ref[2, pl.ds(r0, _SUB_ROWS), :]
        p3 = pred_ref[3, pl.ds(r0, _SUB_ROWS), :]
        t0 = tgt_ref[0, pl.ds(r0, _SUB_ROWS), :]
        t1 = tgt_ref[1, pl.ds(r0, _SUB_ROWS), :]
        t2 = tgt_ref[2, pl.ds(r0, _SUB_ROWS), :]
        t3 = tgt_ref[3, pl.ds(r0, _SUB_ROWS), :]

        if bbox_format == "xywh":
            b1x1 = p0 - 0.5 * p2
            b1y1 = p1 - 0.5 * p3
            b1x2 = p0 + 0.5 * p2
            b1y2 = p1 + 0.5 * p3
            b2x1 = t0 - 0.5 * t2
            b2y1 = t1 - 0.5 * t3
            b2x2 = t0 + 0.5 * t2
            b2y2 = t1 + 0.5 * t3
        else:  # 'xyxy'
            b1x1, b1y1, b1x2, b1y2 = p0, p1, p2, p3
            b2x1, b2y1, b2x2, b2y2 = t0, t1, t2, t3

        overlap = (
            jnp.maximum(jnp.minimum(b1x2, b2x2) - jnp.maximum(b1x1, b2x1), 0.0) *
            jnp.maximum(jnp.minimum(b1y2, b2y2) - jnp.maximum(b1y1, b2y1), 0.0))

        w1 = b1x2 - b1x1
        h1 = b1y2 - b1y1
        w2 = b2x2 - b2x1
        h2 = b2y2 - b2y1
        union = w1 * h1 + w2 * h2 - overlap + eps
        h1e = h1 + eps
        h2e = h2 + eps

        ious = overlap * _recip(union)

        enclose_w = jnp.maximum(
            jnp.maximum(b1x2, b2x2) - jnp.minimum(b1x1, b2x1), 0.0)
        enclose_h = jnp.maximum(
            jnp.maximum(b1y2, b2y2) - jnp.minimum(b1y1, b2y1), 0.0)

        if iou_mode == "ciou":
            enclose_area = enclose_w * enclose_w + enclose_h * enclose_h + eps
            dx = b2x1 + b2x2 - (b1x1 + b1x2)
            dy = b2y1 + b2y2 - (b1y1 + b1y2)
            rho2 = (dx * dx + dy * dy) * 0.25
            # atan(w2/h2e) - atan(w1/h1e) == atan((w2*h1e - w1*h2e) /
            # (h1e*h2e + w1*w2)); valid because w,h >= 0 for well-formed boxes
            # keeps both angles in [0, pi/2). One atan + one recip instead of
            # two atans + three recips.
            atan_num = w2 * h1e - w1 * h2e
            atan_den = h1e * h2e + w1 * w2
            datan = _atan_f32(atan_num * _recip(atan_den))
            wh_ratio = (4.0 / (math.pi ** 2)) * datan * datan
            # alpha is detached in the PyTorch reference; identical fwd value.
            alpha = wh_ratio * _recip(wh_ratio - ious + (1.0 + eps))
            ious = ious - (rho2 * _recip(enclose_area) + alpha * wh_ratio)
        else:  # 'giou'
            convex_area = enclose_w * enclose_h + eps
            ious = ious - (convex_area - union) * _recip(convex_area)
        # TODO(synk): 'siou' needs arcsin/cos/exp/pow in-kernel; not implemented.

        iou = jnp.clip(ious, -1.0, 1.0)
        if write_iou:
            iou_ref[pl.ds(r0, _SUB_ROWS), :] = iou

        # Unmasked accumulation: zero-padded boxes give iou == 0 exactly, i.e.
        # contribute exactly 1.0 each; the wrapper subtracts (n_pad - n).
        return acc + (1.0 - iou)

    acc0 = jnp.zeros((_SUB_ROWS, _LANES), jnp.float32)
    unroll = 2 if iou_mode == "ciou" else 4   # CIoU chain is vreg-pressure heavy
    unroll = max(1, min(unroll, n_inner))
    acc = jax.lax.fori_loop(0, n_inner, body, acc0, unroll=unroll)
    ploss_ref[0] = acc   # per-tile per-lane partial sums; reduced in the wrapper


class IoULossPallas:
    """JAX/Pallas re-implementation of mmyolo IoULoss forward (CIoU / GIoU)."""

    def __init__(self, iou_mode="ciou", bbox_format="xywh", eps=1e-7,
                 reduction="mean", loss_weight=1.0, return_iou=True,
                 max_tile_boxes=128 * 1024):
        assert bbox_format in ("xywh", "xyxy")
        assert iou_mode in ("ciou", "giou")  # TODO(synk): siou not implemented
        assert reduction in ("none", "mean", "sum")
        assert max_tile_boxes % _MIN_TILE == 0
        self.iou_mode = iou_mode
        self.bbox_format = bbox_format
        self.eps = eps
        self.reduction = reduction
        self.loss_weight = loss_weight
        self.return_iou = return_iou
        self.max_tile_boxes = max_tile_boxes

    def _tiling(self, n):
        """Pick (n_pad, tile_boxes, num_tiles); >=2 even tiles when possible."""
        n_pad = max(_MIN_TILE, ((n + _MIN_TILE - 1) // _MIN_TILE) * _MIN_TILE)
        if n_pad < 2 * _MIN_TILE:
            return n_pad, n_pad, 1
        num_tiles = max(2, -(-n_pad // self.max_tile_boxes))
        if num_tiles % 2:
            num_tiles += 1            # even tile count balances v7x's 2 TCs
        tile_boxes = -(-n_pad // num_tiles)
        tile_boxes = ((tile_boxes + _MIN_TILE - 1) // _MIN_TILE) * _MIN_TILE
        n_pad = tile_boxes * num_tiles
        return n_pad, tile_boxes, num_tiles

    def __call__(self, pred, target, weight=None, avg_factor=None,
                 reduction_override=None):
        # TODO(synk): element-wise `weight` / `avg_factor` paths not implemented.
        assert weight is None and avg_factor is None
        assert reduction_override in (None, "none", "mean", "sum")
        reduction = reduction_override if reduction_override else self.reduction

        n = int(pred.shape[0])
        need_iou = self.return_iou or reduction == "none"

        n_pad, tile_boxes, num_tiles = self._tiling(n)
        tile_rows = tile_boxes // _LANES
        rows = n_pad // _LANES

        def _prep(x):
            # Single fused XLA pass; allow_input_fusion below lets the compiler
            # fold it into the pallas operand (no extra HBM round-trip).
            xt = jnp.asarray(x, jnp.float32).T               # (4, n)
            xt = jnp.pad(xt, ((0, 0), (0, n_pad - n)))       # zero padding
            return xt.reshape(4, rows, _LANES)

        pred_r = _prep(pred)
        tgt_r = _prep(target)

        kernel = functools.partial(
            _iou_loss_kernel,
            iou_mode=self.iou_mode,
            bbox_format=self.bbox_format,
            eps=self.eps,
            tile_rows=tile_rows,
            write_iou=need_iou,
        )

        out_specs = []
        out_shape = []
        if need_iou:
            out_specs.append(pl.BlockSpec((tile_rows, _LANES), lambda i: (i, 0)))
            out_shape.append(jax.ShapeDtypeStruct((rows, _LANES), jnp.float32))
        out_specs.append(pl.BlockSpec((1, _SUB_ROWS, _LANES), lambda i: (i, 0, 0)))
        out_shape.append(
            jax.ShapeDtypeStruct((num_tiles, _SUB_ROWS, _LANES), jnp.float32))

        outs = pl.pallas_call(
            kernel,
            grid=(num_tiles,),
            in_specs=[
                pl.BlockSpec((4, tile_rows, _LANES), lambda i: (0, i, 0)),
                pl.BlockSpec((4, tile_rows, _LANES), lambda i: (0, i, 0)),
            ],
            out_specs=out_specs,
            out_shape=tuple(out_shape),
            compiler_params=pltpu.CompilerParams(
                dimension_semantics=("parallel",),
                allow_input_fusion=[True, True]),
        )(pred_r, tgt_r)

        if need_iou:
            iou_tiled, ploss = outs
            iou = iou_tiled.reshape(-1)[:n]
        else:
            ploss = outs[0] if isinstance(outs, (tuple, list)) else outs
            iou = None

        # Padded (all-zero) boxes produce iou == 0 exactly -> each contributes
        # exactly 1.0; remove their static count from the summed loss.
        loss_sum = jnp.sum(ploss) - jnp.float32(n_pad - n)

        if reduction == "mean":
            if n > 0:
                loss = self.loss_weight * (loss_sum / jnp.float32(n))
            else:
                loss = jnp.float32(jnp.nan)   # torch.mean over empty tensor
        elif reduction == "sum":
            loss = self.loss_weight * loss_sum
        else:  # 'none'
            loss = self.loss_weight * (1.0 - iou)

        if self.return_iou:
            return loss, iou
        return loss


def _reference_iou_loss(pred, target, iou_mode="ciou", eps=1e-7):
    """Pure-JAX reference mirroring the PyTorch code (xywh)."""
    p_x1 = pred[:, 0] - 0.5 * pred[:, 2]
    p_y1 = pred[:, 1] - 0.5 * pred[:, 3]
    p_x2 = pred[:, 0] + 0.5 * pred[:, 2]
    p_y2 = pred[:, 1] + 0.5 * pred[:, 3]
    t_x1 = target[:, 0] - 0.5 * target[:, 2]
    t_y1 = target[:, 1] - 0.5 * target[:, 3]
    t_x2 = target[:, 0] + 0.5 * target[:, 2]
    t_y2 = target[:, 1] + 0.5 * target[:, 3]

    overlap = (jnp.maximum(jnp.minimum(p_x2, t_x2) - jnp.maximum(p_x1, t_x1), 0.0) *
               jnp.maximum(jnp.minimum(p_y2, t_y2) - jnp.maximum(p_y1, t_y1), 0.0))
    w1, h1 = p_x2 - p_x1, p_y2 - p_y1
    w2, h2 = t_x2 - t_x1, t_y2 - t_y1
    union = w1 * h1 + w2 * h2 - overlap + eps
    h1e = p_y2 - p_y1 + eps
    h2e = t_y2 - t_y1 + eps
    ious = overlap / union
    enclose_w = jnp.maximum(jnp.maximum(p_x2, t_x2) - jnp.minimum(p_x1, t_x1), 0.0)
    enclose_h = jnp.maximum(jnp.maximum(p_y2, t_y2) - jnp.minimum(p_y1, t_y1), 0.0)
    if iou_mode == "ciou":
        enclose_area = enclose_w ** 2 + enclose_h ** 2 + eps
        rho2 = ((t_x1 + t_x2 - (p_x1 + p_x2)) ** 2 +
                (t_y1 + t_y2 - (p_y1 + p_y2)) ** 2) / 4.0
        wh_ratio = (4.0 / math.pi ** 2) * (
            jnp.arctan(w2 / h2e) - jnp.arctan(w1 / h1e)) ** 2
        alpha = wh_ratio / (wh_ratio - ious + (1.0 + eps))
        ious = ious - (rho2 / enclose_area + alpha * wh_ratio)
    else:  # giou
        convex_area = enclose_w * enclose_h + eps
        ious = ious - (convex_area - union) / convex_area
    iou = jnp.clip(ious, -1.0, 1.0)
    return jnp.mean(1.0 - iou), iou


def _make_boxes(key, n):
    k1, k2, k3, k4 = jax.random.split(key, 4)
    centers_p = jax.random.uniform(k1, (n, 2), jnp.float32, 2.0, 14.0)
    wh_p = jax.random.uniform(k2, (n, 2), jnp.float32, 0.5, 4.0)
    pred = jnp.concatenate([centers_p, wh_p], axis=1)
    centers_t = centers_p + jax.random.uniform(k3, (n, 2), jnp.float32, -1.0, 1.0)
    wh_t = jax.random.uniform(k4, (n, 2), jnp.float32, 0.5, 4.0)
    target = jnp.concatenate([centers_t, wh_t], axis=1)
    return pred, target


if __name__ == "__main__":
    key = jax.random.PRNGKey(0)
    k_a, k_b, k_c = jax.random.split(key, 3)

    # Test 1: CIoU, forced small tiles -> multi-tile (even) parallel grid,
    # n not a multiple of 1024 (guards the mask-free padding correction).
    pred1, tgt1 = _make_boxes(k_a, 2500)
    loss_fn1 = IoULossPallas(iou_mode="ciou", bbox_format="xywh",
                             reduction="mean", loss_weight=1.0,
                             return_iou=True, max_tile_boxes=1024)
    loss1, iou1 = jax.block_until_ready(loss_fn1(pred1, tgt1))
    ref_loss1, ref_iou1 = _reference_iou_loss(pred1, tgt1, "ciou")
    np.testing.assert_allclose(np.asarray(iou1), np.asarray(ref_iou1),
                               rtol=1e-4, atol=1e-4)
    np.testing.assert_allclose(np.asarray(loss1), np.asarray(ref_loss1),
                               rtol=1e-4, atol=1e-4)

    # Test 2: GIoU, tiny n, single tile, default tiling.
    pred2, tgt2 = _make_boxes(k_b, 10)
    loss_fn2 = IoULossPallas(iou_mode="giou", bbox_format="xywh",
                             reduction="mean", loss_weight=1.0, return_iou=True)
    loss2, iou2 = jax.block_until_ready(loss_fn2(pred2, tgt2))
    ref_loss2, ref_iou2 = _reference_iou_loss(pred2, tgt2, "giou")
    np.testing.assert_allclose(np.asarray(iou2), np.asarray(ref_iou2),
                               rtol=1e-4, atol=1e-4)
    np.testing.assert_allclose(np.asarray(loss2), np.asarray(ref_loss2),
                               rtol=1e-4, atol=1e-4)

    # Test 3: CIoU loss-only variant (no iou HBM output), sum reduction,
    # default tiling -> >= 2 tiles on the parallel grid.
    pred3, tgt3 = _make_boxes(k_c, 3000)
    loss_fn3 = IoULossPallas(iou_mode="ciou", bbox_format="xywh",
                             reduction="sum", loss_weight=1.0, return_iou=False)
    loss3 = jax.block_until_ready(loss_fn3(pred3, tgt3))
    _, ref_iou3 = _reference_iou_loss(pred3, tgt3, "ciou")
    ref_sum3 = jnp.sum(1.0 - ref_iou3)
    np.testing.assert_allclose(np.asarray(loss3), np.asarray(ref_sum3),
                               rtol=1e-4, atol=1e-3)

    print("KERNEL_OK")
</pallas_src>

<mosaic_0001>
module attributes {stable_mosaic.version = 11 : i64} {
  func.func @_iou_loss_kernel(%arg0: i32, %arg1: memref<4x8x128xf32, #tpu.memory_space<vmem>>, %arg2: memref<4x8x128xf32, #tpu.memory_space<vmem>>, %arg3: memref<8x128xf32, #tpu.memory_space<vmem>>, %arg4: memref<1x8x128xf32, #tpu.memory_space<vmem>>) attributes {dimension_semantics = [#tpu.dimension_semantics<parallel>], iteration_bounds = array<i64: 4>, scalar_prefetch = 0 : i64, scratch_operands = 0 : i64, tpu.core_type = #tpu.core_type<tc>, window_params = [{transform_indices = @transform_0, window_bounds = array<i64: 4, 8, 128>}, {transform_indices = @transform_1, window_bounds = array<i64: 4, 8, 128>}, {transform_indices = @transform_2, window_bounds = array<i64: 8, 128>}, {transform_indices = @transform_3, window_bounds = array<i64: 1, 8, 128>}]} {
    %cst = arith.constant 0.000000e+00 : f32
    %0 = vector.broadcast %cst : f32 to vector<8x128xf32>
    %c0_i32 = arith.constant 0 : i32
    %c8_i32 = arith.constant 8 : i32
    %1 = arith.muli %c0_i32, %c8_i32 : i32
    %2 = tpu.assume_multiple %1, 8 : i32
    %c0 = arith.constant 0 : index
    %3 = arith.index_cast %2 : i32 to index
    %c0_0 = arith.constant 0 : index
    %4 = vector.load %arg1[%c0, %3, %c0_0] : memref<4x8x128xf32, #tpu.memory_space<vmem>>, vector<1x8x128xf32>
    %5 = vector.shape_cast %4 : vector<1x8x128xf32> to vector<8x128xf32>
    %c1 = arith.constant 1 : index
    %6 = arith.index_cast %2 : i32 to index
    %c0_1 = arith.constant 0 : index
    %7 = vector.load %arg1[%c1, %6, %c0_1] : memref<4x8x128xf32, #tpu.memory_space<vmem>>, vector<1x8x128xf32>
    %8 = vector.shape_cast %7 : vector<1x8x128xf32> to vector<8x128xf32>
    %c2 = arith.constant 2 : index
    %9 = arith.index_cast %2 : i32 to index
    %c0_2 = arith.constant 0 : index
    %10 = vector.load %arg1[%c2, %9, %c0_2] : memref<4x8x128xf32, #tpu.memory_space<vmem>>, vector<1x8x128xf32>
    %11 = vector.shape_cast %10 : vector<1x8x128xf32> to vector<8x128xf32>
    %c3 = arith.constant 3 : index
    %12 = arith.index_cast %2 : i32 to index
    %c0_3 = arith.constant 0 : index
    %13 = vector.load %arg1[%c3, %12, %c0_3] : memref<4x8x128xf32, #tpu.memory_space<vmem>>, vector<1x8x128xf32>
    %14 = vector.shape_cast %13 : vector<1x8x128xf32> to vector<8x128xf32>
    %c0_4 = arith.constant 0 : index
    %15 = arith.index_cast %2 : i32 to index
    %c0_5 = arith.constant 0 : index
    %16 = vector.load %arg2[%c0_4, %15, %c0_5] : memref<4x8x128xf32, #tpu.memory_space<vmem>>, vector<1x8x128xf32>
    %17 = vector.shape_cast %16 : vector<1x8x128xf32> to vector<8x128xf32>
    %c1_6 = arith.constant 1 : index
    %18 = arith.index_cast %2 : i32 to index
    %c0_7 = arith.constant 0 : index
    %19 = vector.load %arg2[%c1_6, %18, %c0_7] : memref<4x8x128xf32, #tpu.memory_space<vmem>>, vector<1x8x128xf32>
    %20 = vector.shape_cast %19 : vector<1x8x128xf32> to vector<8x128xf32>
    %c2_8 = arith.constant 2 : index
    %21 = arith.index_cast %2 : i32 to index
    %c0_9 = arith.constant 0 : index
    %22 = vector.load %arg2[%c2_8, %21, %c0_9] : memref<4x8x128xf32, #tpu.memory_space<vmem>>, vector<1x8x128xf32>
    %23 = vector.shape_cast %22 : vector<1x8x128xf32> to vector<8x128xf32>
    %c3_10 = arith.constant 3 : index
    %24 = arith.index_cast %2 : i32 to index
    %c0_11 = arith.constant 0 : index
    %25 = vector.load %arg2[%c3_10, %24, %c0_11] : memref<4x8x128xf32, #tpu.memory_space<vmem>>, vector<1x8x128xf32>
    %26 = vector.shape_cast %25 : vector<1x8x128xf32> to vector<8x128xf32>
    %cst_12 = arith.constant 5.000000e-01 : f32
    %27 = vector.broadcast %cst_12 : f32 to vector<8x128xf32>
    %28 = arith.mulf %27, %11 : vector<8x128xf32>
    %29 = arith.subf %5, %28 : vector<8x128xf32>
    %cst_13 = arith.constant 5.000000e-01 : f32
    %30 = vector.broadcast %cst_13 : f32 to vector<8x128xf32>
    %31 = arith.mulf %30, %14 : vector<8x128xf32>
    %32 = arith.subf %8, %31 : vector<8x128xf32>
    %cst_14 = arith.constant 5.000000e-01 : f32
    %33 = vector.broadcast %cst_14 : f32 to vector<8x128xf32>
    %34 = arith.mulf %33, %11 : vector<8x128xf32>
    %35 = arith.addf %5, %34 : vector<8x128xf32>
    %cst_15 = arith.constant 5.000000e-01 : f32
    %36 = vector.broadcast %cst_15 : f32 to vector<8x128xf32>
    %37 = arith.mulf %36, %14 : vector<8x128xf32>
    %38 = arith.addf %8, %37 : vector<8x128xf32>
    %cst_16 = arith.constant 5.000000e-01 : f32
    %39 = vector.broadcast %cst_16 : f32 to vector<8x128xf32>
    %40 = arith.mulf %39, %23 : vector<8x128xf32>
    %41 = arith.subf %17, %40 : vector<8x128xf32>
    %cst_17 = arith.constant 5.000000e-01 : f32
    %42 = vector.broadcast %cst_17 : f32 to vector<8x128xf32>
    %43 = arith.mulf %42, %26 : vector<8x128xf32>
    %44 = arith.subf %20, %43 : vector<8x128xf32>
    %cst_18 = arith.constant 5.000000e-01 : f32
    %45 = vector.broadcast %cst_18 : f32 to vector<8x128xf32>
    %46 = arith.mulf %45, %23 : vector<8x128xf32>
    %47 = arith.addf %17, %46 : vector<8x128xf32>
    %cst_19 = arith.constant 5.000000e-01 : f32
    %48 = vector.broadcast %cst_19 : f32 to vector<8x128xf32>
    %49 = arith.mulf %48, %26 : vector<8x128xf32>
    %50 = arith.addf %20, %49 : vector<8x128xf32>
    %51 = arith.minimumf %35, %47 : vector<8x128xf32>
    %52 = arith.maximumf %29, %41 : vector<8x128xf32>
    %53 = arith.subf %51, %52 : vector<8x128xf32>
    %cst_20 = arith.constant 0.000000e+00 : f32
    %54 = vector.broadcast %cst_20 : f32 to vector<8x128xf32>
    %55 = arith.maximumf %53, %54 : vector<8x128xf32>
    %56 = arith.minimumf %38, %50 : vector<8x128xf32>
    %57 = arith.maximumf %32, %44 : vector<8x128xf32>
    %58 = arith.subf %56, %57 : vector<8x128xf32>
    %cst_21 = arith.constant 0.000000e+00 : f32
    %59 = vector.broadcast %cst_21 : f32 to vector<8x128xf32>
    %60 = arith.maximumf %58, %59 : vector<8x128xf32>
    %61 = arith.mulf %55, %60 : vector<8x128xf32>
    %62 = arith.subf %35, %29 : vector<8x128xf32>
    %63 = arith.subf %38, %32 : vector<8x128xf32>
    %64 = arith.subf %47, %41 : vector<8x128xf32>
    %65 = arith.subf %50, %44 : vector<8x128xf32>
    %66 = arith.mulf %62, %63 : vector<8x128xf32>
    %67 = arith.mulf %64, %65 : vector<8x128xf32>
    %68 = arith.addf %66, %67 : vector<8x128xf32>
    %69 = arith.subf %68, %61 : vector<8x128xf32>
    %cst_22 = arith.constant 1.000000e-07 : f32
    %70 = vector.broadcast %cst_22 : f32 to vector<8x128xf32>
    %71 = arith.addf %69, %70 : vector<8x128xf32>
    %cst_23 = arith.constant 1.000000e-07 : f32
    %72 = vector.broadcast %cst_23 : f32 to vector<8x128xf32>
    %73 = arith.addf %63, %72 : vector<8x128xf32>
    %cst_24 = arith.constant 1.000000e-07 : f32
    %74 = vector.broadcast %cst_24 : f32 to vector<8x128xf32>
    %75 = arith.addf %65, %74 : vector<8x128xf32>
    %76 = tpu.reciprocal %71 {approx = true} : vector<8x128xf32> -> vector<8x128xf32>
    %77 = arith.mulf %71, %76 : vector<8x128xf32>
    %cst_25 = arith.constant 2.000000e+00 : f32
    %78 = vector.broadcast %cst_25 : f32 to vector<8x128xf32>
    %79 = arith.subf %78, %77 : vector<8x128xf32>
    %80 = arith.mulf %76, %79 : vector<8x128xf32>
    %81 = arith.mulf %61, %80 : vector<8x128xf32>
    %82 = arith.maximumf %35, %47 : vector<8x128xf32>
    %83 = arith.minimumf %29, %41 : vector<8x128xf32>
    %84 = arith.subf %82, %83 : vector<8x128xf32>
    %cst_26 = arith.constant 0.000000e+00 : f32
    %85 = vector.broadcast %cst_26 : f32 to vector<8x128xf32>
    %86 = arith.maximumf %84, %85 : vector<8x128xf32>
    %87 = arith.maximumf %38, %50 : vector<8x128xf32>
    %88 = arith.minimumf %32, %44 : vector<8x128xf32>
    %89 = arith.subf %87, %88 : vector<8x128xf32>
    %cst_27 = arith.constant 0.000000e+00 : f32
    %90 = vector.broadcast %cst_27 : f32 to vector<8x128xf32>
    %91 = arith.maximumf %89, %90 : vector<8x128xf32>
    %92 = arith.mulf %86, %86 : vector<8x128xf32>
    %93 = arith.mulf %91, %91 : vector<8x128xf32>
    %94 = arith.addf %92, %93 : vector<8x128xf32>
    %cst_28 = arith.constant 1.000000e-07 : f32
    %95 = vector.broadcast %cst_28 : f32 to vector<8x128xf32>
    %96 = arith.addf %94, %95 : vector<8x128xf32>
    %97 = arith.addf %41, %47 : vector<8x128xf32>
    %98 = arith.addf %29, %35 : vector<8x128xf32>
    %99 = arith.subf %97, %98 : vector<8x128xf32>
    %100 = arith.addf %44, %50 : vector<8x128xf32>
    %101 = arith.addf %32, %38 : vector<8x128xf32>
    %102 = arith.subf %100, %101 : vector<8x128xf32>
    %103 = arith.mulf %99, %99 : vector<8x128xf32>
    %104 = arith.mulf %102, %102 : vector<8x128xf32>
    %105 = arith.addf %103, %104 : vector<8x128xf32>
    %cst_29 = arith.constant 2.500000e-01 : f32
    %106 = vector.broadcast %cst_29 : f32 to vector<8x128xf32>
    %107 = arith.mulf %105, %106 : vector<8x128xf32>
    %108 = arith.mulf %64, %73 : vector<8x128xf32>
    %109 = arith.mulf %62, %75 : vector<8x128xf32>
    %110 = arith.subf %108, %109 : vector<8x128xf32>
    %111 = arith.mulf %73, %75 : vector<8x128xf32>
    %112 = arith.mulf %62, %64 : vector<8x128xf32>
    %113 = arith.addf %111, %112 : vector<8x128xf32>
    %114 = tpu.reciprocal %113 {approx = true} : vector<8x128xf32> -> vector<8x128xf32>
    %115 = arith.mulf %113, %114 : vector<8x128xf32>
    %cst_30 = arith.constant 2.000000e+00 : f32
    %116 = vector.broadcast %cst_30 : f32 to vector<8x128xf32>
    %117 = arith.subf %116, %115 : vector<8x128xf32>
    %118 = arith.mulf %114, %117 : vector<8x128xf32>
    %119 = arith.mulf %110, %118 : vector<8x128xf32>
    %cst_31 = arith.constant 0.000000e+00 : f32
    %120 = vector.broadcast %cst_31 : f32 to vector<8x128xf32>
    %121 = arith.cmpf olt, %119, %120 : vector<8x128xf32>
    %cst_32 = arith.constant -1.000000e+00 : f32
    %cst_33 = arith.constant 1.000000e+00 : f32
    %122 = vector.broadcast %cst_32 : f32 to vector<8x128xf32>
    %123 = vector.broadcast %cst_33 : f32 to vector<8x128xf32>
    %124 = arith.select %121, %122, %123 : vector<8x128xi1>, vector<8x128xf32>
    %125 = math.absf %119 : vector<8x128xf32>
    %cst_34 = arith.constant 2.41421366 : f32
    %126 = vector.broadcast %cst_34 : f32 to vector<8x128xf32>
    %127 = arith.cmpf ogt, %125, %126 : vector<8x128xf32>
    %cst_35 = arith.constant 0.414213568 : f32
    %128 = vector.broadcast %cst_35 : f32 to vector<8x128xf32>
    %129 = arith.cmpf ogt, %125, %128 : vector<8x128xf32>
    %cst_36 = arith.constant 1.000000e+00 : f32
    %130 = vector.broadcast %cst_36 : f32 to vector<8x128xf32>
    %131 = arith.subf %125, %130 : vector<8x128xf32>
    %cst_37 = arith.constant -1.000000e+00 : f32
    %132 = vector.broadcast %cst_37 : f32 to vector<8x128xf32>
    %133 = arith.select %127, %132, %131 : vector<8x128xi1>, vector<8x128xf32>
    %cst_38 = arith.constant 1.000000e+00 : f32
    %134 = vector.broadcast %cst_38 : f32 to vector<8x128xf32>
    %135 = arith.addf %125, %134 : vector<8x128xf32>
    %136 = arith.select %127, %125, %135 : vector<8x128xi1>, vector<8x128xf32>
    %137 = tpu.reciprocal %136 {approx = true} : vector<8x128xf32> -> vector<8x128xf32>
    %138 = arith.mulf %136, %137 : vector<8x128xf32>
    %cst_39 = arith.constant 2.000000e+00 : f32
    %139 = vector.broadcast %cst_39 : f32 to vector<8x128xf32>
    %140 = arith.subf %139, %138 : vector<8x128xf32>
    %141 = arith.mulf %137, %140 : vector<8x128xf32>
    %142 = arith.mulf %133, %141 : vector<8x128xf32>
    %143 = arith.select %129, %142, %125 : vector<8x128xi1>, vector<8x128xf32>
    %144 = arith.mulf %143, %143 : vector<8x128xf32>
    %cst_40 = arith.constant 0.0805374458 : f32
    %145 = vector.broadcast %cst_40 : f32 to vector<8x128xf32>
    %146 = arith.mulf %145, %144 : vector<8x128xf32>
    %cst_41 = arith.constant 0.138776854 : f32
    %147 = vector.broadcast %cst_41 : f32 to vector<8x128xf32>
    %148 = arith.subf %146, %147 : vector<8x128xf32>
    %149 = arith.mulf %148, %144 : vector<8x128xf32>
    %cst_42 = arith.constant 0.199777111 : f32
    %150 = vector.broadcast %cst_42 : f32 to vector<8x128xf32>
    %151 = arith.addf %149, %150 : vector<8x128xf32>
    %152 = arith.mulf %151, %144 : vector<8x128xf32>
    %cst_43 = arith.constant 0.333329499 : f32
    %153 = vector.broadcast %cst_43 : f32 to vector<8x128xf32>
    %154 = arith.subf %152, %153 : vector<8x128xf32>
    %155 = arith.mulf %154, %144 : vector<8x128xf32>
    %156 = arith.mulf %155, %143 : vector<8x128xf32>
    %157 = arith.addf %156, %143 : vector<8x128xf32>
    %cst_44 = arith.constant 0.785398185 : f32
    %cst_45 = arith.constant 0.000000e+00 : f32
    %158 = vector.broadcast %cst_44 : f32 to vector<8x128xf32>
    %159 = vector.broadcast %cst_45 : f32 to vector<8x128xf32>
    %160 = arith.select %129, %158, %159 : vector<8x128xi1>, vector<8x128xf32>
    %cst_46 = arith.constant 1.57079637 : f32
    %161 = vector.broadcast %cst_46 : f32 to vector<8x128xf32>
    %162 = arith.select %127, %161, %160 : vector<8x128xi1>, vector<8x128xf32>
    %163 = arith.addf %162, %157 : vector<8x128xf32>
    %164 = arith.mulf %124, %163 : vector<8x128xf32>
    %cst_47 = arith.constant 0.405284733 : f32
    %165 = vector.broadcast %cst_47 : f32 to vector<8x128xf32>
    %166 = arith.mulf %165, %164 : vector<8x128xf32>
    %167 = arith.mulf %166, %164 : vector<8x128xf32>
    %168 = arith.subf %167, %81 : vector<8x128xf32>
    %cst_48 = arith.constant 1.00000012 : f32
    %169 = vector.broadcast %cst_48 : f32 to vector<8x128xf32>
    %170 = arith.addf %168, %169 : vector<8x128xf32>
    %171 = tpu.reciprocal %170 {approx = true} : vector<8x128xf32> -> vector<8x128xf32>
    %172 = arith.mulf %170, %171 : vector<8x128xf32>
    %cst_49 = arith.constant 2.000000e+00 : f32
    %173 = vector.broadcast %cst_49 : f32 to vector<8x128xf32>
    %174 = arith.subf %173, %172 : vector<8x128xf32>
    %175 = arith.mulf %171, %174 : vector<8x128xf32>
    %176 = arith.mulf %167, %175 : vector<8x128xf32>
    %177 = tpu.reciprocal %96 {approx = true} : vector<8x128xf32> -> vector<8x128xf32>
    %178 = arith.mulf %96, %177 : vector<8x128xf32>
    %cst_50 = arith.constant 2.000000e+00 : f32
    %179 = vector.broadcast %cst_50 : f32 to vector<8x128xf32>
    %180 = arith.subf %179, %178 : vector<8x128xf32>
    %181 = arith.mulf %177, %180 : vector<8x128xf32>
    %182 = arith.mulf %107, %181 : vector<8x128xf32>
    %183 = arith.mulf %176, %167 : vector<8x128xf32>
    %184 = arith.addf %182, %183 : vector<8x128xf32>
    %185 = arith.subf %81, %184 : vector<8x128xf32>
    %cst_51 = arith.constant -1.000000e+00 : f32
    %cst_52 = arith.constant 1.000000e+00 : f32
    %186 = vector.broadcast %cst_51 : f32 to vector<8x128xf32>
    %187 = arith.maximumf %186, %185 : vector<8x128xf32>
    %188 = vector.broadcast %cst_52 : f32 to vector<8x128xf32>
    %189 = arith.minimumf %188, %187 : vector<8x128xf32>
    %190 = arith.index_cast %2 : i32 to index
    %c0_53 = arith.constant 0 : index
    %191 = vector.load %arg3[%190, %c0_53] : memref<8x128xf32, #tpu.memory_space<vmem>>, vector<8x128xf32>
    tpu.vector_store %arg3[%190, %c0_53], %189 {strides = array<i32>} : memref<8x128xf32, #tpu.memory_space<vmem>>, vector<8x128xf32>,
    %cst_54 = arith.constant 1.000000e+00 : f32
    %192 = vector.broadcast %cst_54 : f32 to vector<8x128xf32>
    %193 = arith.subf %192, %189 : vector<8x128xf32>
    %194 = arith.addf %0, %193 : vector<8x128xf32>
    %c1_i32 = arith.constant 1 : i32
    %c0_55 = arith.constant 0 : index
    %c0_56 = arith.constant 0 : index
    %c0_57 = arith.constant 0 : index
    %195 = vector.load %arg4[%c0_55, %c0_56, %c0_57] : memref<1x8x128xf32, #tpu.memory_space<vmem>>, vector<1x8x128xf32>
    %196 = vector.shape_cast %195 : vector<1x8x128xf32> to vector<8x128xf32>
    %197 = vector.shape_cast %194 : vector<8x128xf32> to vector<1x8x128xf32>
    tpu.vector_store %arg4[%c0_55, %c0_56, %c0_57], %197 {strides = array<i32>} : memref<1x8x128xf32, #tpu.memory_space<vmem>>, vector<1x8x128xf32>,
    return
  }
  func.func @transform_0(%arg0: i32) -> (i32, i32, i32) {
    %c0_i32 = arith.constant 0 : i32
    %c0_i32_0 = arith.constant 0 : i32
    %c0_i32_1 = arith.constant 0 : i32
    return %c0_i32, %arg0, %c0_i32_0 : i32, i32, i32
  }
  func.func @transform_1(%arg0: i32) -> (i32, i32, i32) {
    %c0_i32 = arith.constant 0 : i32
    %c0_i32_0 = arith.constant 0 : i32
    %c0_i32_1 = arith.constant 0 : i32
    return %c0_i32, %arg0, %c0_i32_0 : i32, i32, i32
  }
  func.func @transform_2(%arg0: i32) -> (i32, i32) {
    %c0_i32 = arith.constant 0 : i32
    %c0_i32_0 = arith.constant 0 : i32
    return %arg0, %c0_i32 : i32, i32
  }
  func.func @transform_3(%arg0: i32) -> (i32, i32, i32) {
    %c0_i32 = arith.constant 0 : i32
    %c0_i32_0 = arith.constant 0 : i32
    %c0_i32_1 = arith.constant 0 : i32
    return %arg0, %c0_i32, %c0_i32_0 : i32, i32, i32
  }
}

</mosaic_0001>

<bundles_post_ra>
// kernel: tpu_custom_call.1
= control target key start
LH: loop header
LB: loop body
LE: loop exit
PB: predicated region body
PF: predicated region fallthrough
CT: control target
= control target key end

     0   :  { %9 = vsyncpa [#allocation3], 0  ;;  %s1090_s0 = inlined_call_operand.hbm [shape: f32[4,32,128], index: 0, kind: input, shape index: {}]   ;;  %s1091_s1 = inlined_call_operand.hbm [shape: f32[4,32,128], index: 1, kind: input, shape index: {}]   ;;  %s1092_s2 = inlined_call_operand.hbm [shape: f32[32,128], index: 2, kind: output, shape index: {0}]   ;;  %s1093_s3 = inlined_call_operand.hbm [shape: f32[4,8,128], index: 3, kind: output, shape index: {1}]  }
   0x1   :  { %11 = vsyncpa [#allocation3 + $0x1], 0 }
   0x2   :  { %12 = vsyncpa [#allocation6], 0 }
   0x3   :  { %14 = vsyncpa [#allocation6 + $0x1], 0 }
   0x4   :  { %15 = vsyncpa [#allocation4], 0 }
   0x5   :  { %17 = vsyncpa [#allocation4 + $0x1], 0 }
   0x6   :  { %18 = vsyncpa [#allocation9], 0 }
   0x7   :  { %20 = vsyncpa [#allocation9 + $0x1], 0  ;;  %s832_s12 = smov 0   ;;  %s834_s13 = smov 0  }
   0x8   :  { %s836_s14 = smov 0   ;;  %s838_s15 = smov 0  }
   0x9 LB: > { %s853_s16 = sadd.s32 4294967295, %s801_s15   ;;  %s540_s17 = sadd.s32 4294967294, %s801_s15   ;;  %s801_s15 = sphi %s838_s15, %s1109_s15   ;;  %s797_s14 = sphi %s836_s14, %s1108_s14   ;;  %s793_s13 = sphi %s834_s13, %s1107_s13   ;;  %s789_s12 = sphi %s832_s12, %s1106_s12  }
   0xa   : > { %s857_s18 = sadd.s32 1, %s801_s15   ;;  %s33_s19 = sadd.s32 1, %s797_s14 }
   0xb   : > { %s30_s20 = ssub.s32 %s801_s15, %s857_s18  ;;  %p40_p0 = scmp.ne.s32.totalorder %s797_s14, %s793_s13 }
   0xc   : > { %p31_p1 = scmp.eq.s32.totalorder %s30_s20, 0  ;;  %p41_p2 = scmp.eq.s32.totalorder %s801_s15, 0 }
   0xd   : > { %p46_p3 = scmp.ne.s32.totalorder %s793_s13, %s789_s12  ;;  %p47_p4 = scmp.eq.s32.totalorder %s853_s16, 0 }
   0xe   : > { %s869_s21 = scalar_select %p31_p1, %s797_s14, %s33_s19  }
   0xf   : > { %p871_p5 = por %p41_p2, %p40_p0  ;;  %p875_p6 = por %p47_p4, %p46_p3 }
  0x10   : > { %p96_p7 = scmp.eq.s32.totalorder %s853_s16, 3  ;;  %p102_p8 = scmp.eq.s32.totalorder %s540_s17, 3 }
  0x11   : > { %s1097_s23 = scalar_select %p875_p6, 1, 0 }
  0x12   : > { %p590_p9 = scmp.lt.s32.totalorder %s801_s15, 4  ;;  %p881_p10 = por %p96_p7, %p40_p0 }
  0x13   : > { %p885_p11 = por %p102_p8, %p46_p3  ;;  %s890_s26 = sand.u32 1, %s797_s14  }
  0x14   : > { %s1098_s24 = scalar_select %p881_p10, 1, 0 }
  0x15   : > { %s1099_s25 = scalar_select %p885_p11, 1, 0 }
  0x16   : > { %s544_s27 = sshll.u32 %s801_s15, 7  ;;  %s543_s28 = sshll.u32 %s890_s26, 5 }
  0x17   : > { %s899_s4 = scalar_lea.hbm %s1090_s0, %s544_s27  ;;  %s152_s5 = scalar_lea.vmem [#allocation2], %s543_s28 }
  0x18   : > { %s158_s6 = sshll.u32 %s152_s5, 4  ;;  %p905_p12 = pnand %p590_p9, %p871_p5  ;;  %s909_s6 = int_to_ptr.vmem [resolvable:$true] %s158_s6 }
  0x19   : > { %s149_s8 = scalar_lea.sflag [#allocation3], %s890_s26  ;;  %s639_s9 = scalar_lea.hbm %s899_s4, 512 }
  0x1a   : > { %p640_p0 = scmp.ne.s32.totalorder %s899_s4, %s639_s9  ;;  %p641_p1 = pneg %p905_p12 }
  0x1b   : > { %s644_s17 = scalar_lea.hbm %s1090_s0, 2048  ;;  %p645_p4 = scmp.lt.u32.totalorder %s899_s4, %s1090_s0 }
  0x1c   : > { %p642_p2 = pnand %p641_p1, %p640_p0  ;;  %p646_p5 = scmp.lt.u32.totalorder %s644_s17, %s639_s9 }
  0x1d   : > { %p648_p8 = scmp.lt.u32.totalorder %s639_s9, %s899_s4 }
  0x1e   : > { %p643_p3 = pneg %p642_p2  ;;  %p647_p7 = por %p646_p5, %p645_p4 }
  0x20   : > { %p649_p9 = por %p648_p8, %p647_p7 }
  0x22   : > { %p650_p13 = pnand %p649_p9, %p643_p3 }
  0x24   : > { %653 = shalt.err (!%p650_p13)
}
  0x25   : > { %s654_s22 = scalar_lea.vmem %s909_s6, 512  ;;  %s803_s29 = smov [#allocation2]  }
  0x26   : > { %p655_p0 = scmp.ne.s32.totalorder %s909_s6, %s654_s22  ;;  %s659_s30 = sshll.u32 %s803_s29, 4  ;;  %s660_s30 = int_to_ptr.vmem [resolvable:$false] %s659_s30 }
  0x27   : > { %s661_s5 = scalar_lea.vmem %s660_s30, 1024  ;;  %p662_p10 = scmp.lt.s32.totalorder %s909_s6, %s660_s30 }
  0x28   : > { %p657_p2 = pnand %p655_p0, %p641_p1  ;;  %p663_p4 = scmp.lt.s32.totalorder %s661_s5, %s654_s22 }
  0x2a   : > { %p658_p11 = pneg %p657_p2  ;;  %p664_p5 = por %p663_p4, %p662_p10 }
  0x2c   : > { %p665_p7 = pnand %p664_p5, %p658_p11 }
  0x2e   : > { %668 = shalt.err (!%p665_p7)
}
  0x2f   : > { %s804_s9 = smov 512   ;;  %s805_s10 = smov 128  }
  0x30   : > { %s806_s11 = smov 8   ;;  %p186_p10 = scmp.lt.s32.totalorder %s801_s15, 5 }
  0x31   : > { %579 = dma.hbm_to_vmem [thread:$0]  (!%p905_p12), %s899_s4, 512, %s909_s6, %s149_s8, %s804_s9, %s805_s10, %s806_s11  }
  0x32   : > { %s949_s20 = scalar_lea.hbm %s1091_s1, %s544_s27  ;;  %p1101_p11 = scmp.ge.s32.totalorder %s801_s15, 1 }
  0x33   : > { %s172_s29 = scalar_lea.vmem [#allocation5], %s543_s28  ;;  %s169_s4 = scalar_lea.sflag [#allocation6], %s890_s26 }
  0x34   : > { %p953_p13 = pnand %p1101_p11, %p186_p10  ;;  %s178_s30 = sshll.u32 %s172_s29, 4  ;;  %s959_s30 = int_to_ptr.vmem [resolvable:$true] %s178_s30 }
  0x35   : > { %s669_s6 = scalar_lea.hbm %s949_s20, 512  ;;  %s674_s5 = scalar_lea.hbm %s1091_s1, 2048 }
  0x36   : > { %p670_p3 = scmp.ne.s32.totalorder %s949_s20, %s669_s6  ;;  %p675_p0 = scmp.lt.u32.totalorder %s949_s20, %s1091_s1 }
  0x37   : > { %p676_p2 = scmp.lt.u32.totalorder %s674_s5, %s669_s6  ;;  %p678_p5 = scmp.lt.u32.totalorder %s669_s6, %s949_s20 }
  0x38   : > { %p672_p8 = pnand %p670_p3, %p641_p1 }
  0x39   : > { %p677_p4 = por %p676_p2, %p675_p0 }
  0x3a   : > { %p673_p9 = pneg %p672_p8 }
  0x3b   : > { %p679_p7 = por %p678_p5, %p677_p4 }
  0x3d   : > { %p680_p10 = pnand %p679_p7, %p673_p9 }
  0x3f   : > { %683 = shalt.err (!%p680_p10)
}
  0x40   : > { %s684_s28 = scalar_lea.vmem %s959_s30, 512  ;;  %s807_s29 = smov [#allocation5]  }
  0x41   : > { %p685_p11 = scmp.ne.s32.totalorder %s959_s30, %s684_s28  ;;  %s689_s27 = sshll.u32 %s807_s29, 4  ;;  %s690_s27 = int_to_ptr.vmem [resolvable:$false] %s689_s27 }
  0x42   : > { %s691_s8 = scalar_lea.vmem %s690_s27, 1024  ;;  %p692_p6 = scmp.lt.s32.totalorder %s959_s30, %s690_s27 }
  0x43   : > { %p687_p3 = pnand %p685_p11, %p641_p1  ;;  %p693_p0 = scmp.lt.s32.totalorder %s691_s8, %s684_s28 }
  0x45   : > { %p688_p8 = pneg %p687_p3  ;;  %p694_p2 = por %p693_p0, %p692_p6 }
  0x47   : > { %p695_p4 = pnand %p694_p2, %p688_p8 }
  0x49   : > { %698 = shalt.err (!%p695_p4)
}
  0x4a   : > { %582 = dma.hbm_to_vmem [thread:$0]  (!%p905_p12), %s949_s20, 512, %s959_s30, %s169_s4, %s804_s9, %s805_s10, %s806_s11  }
  0x4b   : > { %190 = sbr.rel (%p953_p13) target bundleno = 240 (0xf0), region = 28  ;;  %s993_s6 = sand.u32 (!%p953_p13), 1, %s793_s13  }
  0x4c   : > { %s548_s5 = sshll.u32 (!%p953_p13), %s993_s6, 5  ;;  %s193_s17 = scalar_lea.sflag (!%p953_p13), [#allocation3], %s993_s6 }
  0x4d   : > { %s196_s7 = scalar_lea.vmem (!%p953_p13), [#allocation2], %s548_s5  ;;  %p1103_p6 = scmp.ne.s32.totalorder (!%p953_p13), %s1097_s23, 0 }
  0x52   : > { %772 = dma.done.wait (%p1103_p6), %s193_s17, 512  }
  0x53   : > { %774 = vsyncadd (%p1103_p6), %s193_s17, 4294966784  ;;  %s202_s26 = scalar_lea.sflag [#allocation6], %s993_s6  ;;  %s205_s9 = scalar_lea.vmem [#allocation5], %s548_s5 }
  0x54   : > { %776 = dma.done.wait (%p1103_p6), %s202_s26, 512  }
  0x55   : > { %778 = vsyncadd (%p1103_p6), %s202_s26, 4294966784  ;;  %v238_v0 = vld [vmem:[%s196_s7] sm:$0xff]  ;;  %v553_v1 = vld [vmem:[%s196_s7 + $0x10] sm:$0xff]  ;;  %s550_s23 = sshll.u32 %s993_s6, 3  ;;  %s564_s20 = sshll.u32 %s853_s16, 7 }
  0x56   : > { %v552_v2 = vld [vmem:[%s196_s7 + $0x8] sm:$0xff]  ;;  %v554_v3 = vld [vmem:[%s196_s7 + $0x18] sm:$0xff]  ;;  %v248_v4 = vld [vmem:[%s205_s9] sm:$0xff]  ;;  %v255_v5 = vmul.f32 0.5, %v553_v1  ;;  %s230_s10 = scalar_lea.vmem [#allocation7], %s550_s23  ;;  %s1011_s22 = scalar_lea.vmem [#allocation8], %s550_s23 }
  0x57   : > { %v555_v6 = vld [vmem:[%s205_s9 + $0x8] sm:$0xff]  ;;  %v556_v7 = vld [vmem:[%s205_s9 + $0x10] sm:$0xff]  ;;  %v557_v8 = vld [vmem:[%s205_s9 + $0x18] sm:$0xff]  ;;  %v257_v9 = vmul.f32 0.5, %v554_v3  ;;  %s396_s11 = sshll.u32 %s230_s10, 4  ;;  %s409_s30 = sshll.u32 %s1011_s22, 4  ;;  %s1014_s11 = int_to_ptr.vmem [resolvable:$true] %s396_s11  ;;  %s1021_s30 = int_to_ptr.vmem [resolvable:$true] %s409_s30 }
  0x58   : > { %v261_v10 = vmul.f32 0.5, %v556_v7  ;;  %v263_v11 = vmul.f32 0.5, %v557_v8  ;;  %v256_v12 = vsub.f32 %v238_v0, %v255_v5  ;;  %v259_v14 = vadd.f32 %v255_v5, %v238_v0  ;;  %s1019_s28 = scalar_lea.hbm %s1092_s2, %s564_s20  ;;  %s1026_s27 = scalar_lea.hbm %s1093_s3, %s564_s20 }
  0x59   : > { %v258_v13 = vsub.f32 %v552_v2, %v257_v9  ;;  %v260_v15 = vadd.f32 %v552_v2, %v257_v9  ;;  %s378_s8 = scalar_lea.sflag [#allocation4], %s993_s6  ;;  %s699_s5 = scalar_lea.vmem %s1014_s11, 128 }
  0x5a   : > { %v262_v16 = vsub.f32 %v248_v4, %v261_v10  ;;  %v264_v17 = vsub.f32 %v555_v6, %v263_v11  ;;  %v265_v18 = vadd.f32 %v261_v10, %v248_v4  ;;  %v266_v19 = vadd.f32 %v555_v6, %v263_v11  ;;  %p700_p12 = scmp.ne.s32.totalorder %s1014_s11, %s699_s5  ;;  %p1104_p1 = scmp.ne.s32.totalorder %s1098_s24, 0 }
  0x5b   : > { %v277_v20 = vsub.f32 %v260_v15, %v258_v13  ;;  %v305_v21 = vadd.f32 %v259_v14, %v256_v12  ;;  %v308_v22 = vadd.f32 %v260_v15, %v258_v13  ;;  %v276_v24 = vsub.f32 %v259_v14, %v256_v12  ;;  %s810_s17 = smov [#allocation7]  }
  0x5c   : > { %v279_v23 = vsub.f32 %v266_v19, %v264_v17  ;;  %v278_v25 = vsub.f32 %v265_v18, %v262_v16  ;;  %v292_v26 = vmax.f32 %v259_v14, %v265_v18  ;;  %v293_v27 = vmin.f32 %v256_v12, %v262_v16  ;;  %p701_p13 = pnand %p700_p12, %p1104_p1  ;;  %s703_s7 = sshll.u32 %s810_s17, 4  ;;  %s704_s7 = int_to_ptr.vmem [resolvable:$false] %s703_s7 }
  0x5d   : > { %v285_v28 = vadd.f32 1e-07, %v277_v20  ;;  %v296_v30 = vmax.f32 %v260_v15, %v266_v19  ;;  %v297_v31 = vmin.f32 %v258_v13, %v264_v17  ;;  %v304_v33 = vadd.f32 %v265_v18, %v262_v16  ;;  %s705_s26 = scalar_lea.vmem %s704_s7, 256  ;;  %p706_p5 = scmp.lt.s32.totalorder %s1014_s11, %s704_s7 }
  0x5e   : > { %v286_v29 = vadd.f32 1e-07, %v279_v23  ;;  %v294_v32 = vsub.f32 %v292_v26, %v293_v27  ;;  %v307_v35 = vadd.f32 %v266_v19, %v264_v17  ;;  %v318_v41 = vmul.f32 %v278_v25, %v276_v24  ;;  %p702_p9 = pneg %p701_p13  ;;  %p707_p7 = scmp.lt.s32.totalorder %s705_s26, %s699_s5 }
  0x5f   : > { %v298_v34 = vsub.f32 %v296_v30, %v297_v31  ;;  %v306_v37 = vsub.f32 %v304_v33, %v305_v21  ;;  %v314_v50 = vmul.f32 %v285_v28, %v278_v25  ;;  %v267_v61 = vmin.f32 %v259_v14, %v265_v18 }
  0x60   : > { %v295_v36 = vmax.f32 %v294_v32, 0.0  ;;  %v309_v39 = vsub.f32 %v307_v35, %v308_v22  ;;  %v317_v40 = vmul.f32 %v286_v29, %v285_v28  ;;  %v315_v51 = vmul.f32 %v286_v29, %v276_v24  ;;  %p708_p10 = por %p707_p7, %p706_p5 }
  0x61   : > { %v299_v38 = vmax.f32 %v298_v34, 0.0  ;;  %v310_v43 = vmul.f32 %v306_v37, %v306_v37  ;;  %v268_v62 = vmax.f32 %v256_v12, %v262_v16  ;;  %v271_v0 = vmin.f32 %v260_v15, %v266_v19 }
  0x62   : > { %v300_v42 = vmul.f32 %v295_v36, %v295_v36  ;;  %v311_v45 = vmul.f32 %v309_v39, %v309_v39  ;;  %v319_v46 = vadd.f32 %v318_v41, %v317_v40  ;;  %v316_v54 = vsub.f32 %v314_v50, %v315_v51  ;;  %p709_p11 = pnand %p708_p10, %p702_p9 }
  0x63   : > { %v301_v44 = vmul.f32 %v299_v38, %v299_v38  ;;  %v272_v1 = vmax.f32 %v258_v13, %v264_v17  ;;  %v269_v6 = vsub.f32 %v267_v61, %v268_v62  ;;  %v280_v11 = vmul.f32 %v277_v20, %v276_v24 }
  0x64   : > { %v312_v48 = vadd.f32 %v311_v45, %v310_v43  ;;  %629 = vrcp.f32 %v319_v46  ;;  %v281_v21 = vmul.f32 %v279_v23, %v278_v25  ;;  %v808_v35 = vmov 0.0  }
  0x65   : > { %v302_v47 = vadd.f32 %v301_v44, %v300_v42  ;;  %v273_v7 = vsub.f32 %v271_v0, %v272_v1  ;;  %v270_v9 = vmax.f32 %v269_v6, 0.0  ;;  %v809_v41 = vmov 1.0  }
  0x66   : > { %v313_v63 = vmul.f32 0.25, %v312_v48  ;;  %v282_v14 = vadd.f32 %v281_v21, %v280_v11 }
  0x67   : > { %v303_v49 = vadd.f32 1e-07, %v302_v47  ;;  %v274_v10 = vmax.f32 %v273_v7, 0.0 }
  0x69   : > { %631 = vrcp.f32 %v303_v49  ;;  %v275_v22 = vmul.f32 %v274_v10, %v270_v9 }
  0x6b   : > { %v283_v15 = vsub.f32 %v282_v14, %v275_v22 }
  0x6d   : > { %v284_v19 = vadd.f32 1e-07, %v283_v15 }
  0x6e   : > { %v630_v52 = vpop.eup %629 }
  0x6f   : > { %v321_v53 = vmul.f32 %v630_v52, %v319_v46 }
  0x71   : > { %v322_v55 = vsub.f32 2.0, %v321_v53 }
  0x73   : > { %v632_v56 = vpop.eup %631  ;;  %v323_v57 = vmul.f32 %v630_v52, %v322_v55 }
  0x74   : > { %v364_v58 = vmul.f32 %v632_v56, %v303_v49 }
  0x75   : > { %v324_v59 = vmul.f32 %v323_v57, %v316_v54 }
  0x76   : > { %v365_v60 = vsub.f32 2.0, %v364_v58 }
  0x77   : > { %v327_v2 = vand.u32 2147483647, %v324_v59  ;;  %vm325_vm2 = vcmp.lt.f32.partialorder %v324_v59, 0.0 }
  0x78   : > { %v366_v3 = vmul.f32 %v632_v56, %v365_v60  ;;  %v326_v42 = vsel %vm325_vm2, -1.0, %v809_v41 }
  0x79   : > { %vm328_vm0 = vcmp.gt.f32.partialorder %v327_v2, 2.4142137  ;;  %v332_v4 = vadd.f32 1.0, %v327_v2  ;;  %v558_v16 = vadd.f32 -1.0, %v327_v2  ;;  %vm329_vm1 = vcmp.gt.f32.partialorder %v327_v2, 0.41421357 }
  0x7a   : > { %v367_v5 = vmul.f32 %v366_v3, %v313_v63  ;;  %v350_v36 = vsel %vm329_vm1, 0.7853982, %v808_v35 }
  0x7b   : > { %v333_v8 = vsel %vm328_vm0, %v327_v2, %v332_v4  ;;  %v331_v18 = vsel %vm328_vm0, -1.0, %v558_v16  ;;  %v351_v39 = vsel %vm328_vm0, 1.5707964, %v350_v36 }
  0x7c   : > { %633 = vrcp.f32 %v333_v8 }
  0x7d   : > { %635 = vrcp.f32 %v284_v19 }
  0x86   : > { %v634_v12 = vpop.eup %633 }
  0x87   : > { %v335_v13 = vmul.f32 %v634_v12, %v333_v8  ;;  %v636_v24 = vpop.eup %635 }
  0x88   : > { %v288_v32 = vmul.f32 %v636_v24, %v284_v19 }
  0x89   : > { %v336_v17 = vsub.f32 2.0, %v335_v13 }
  0x8a   : > { %v289_v37 = vsub.f32 2.0, %v288_v32 }
  0x8b   : > { %v337_v26 = vmul.f32 %v634_v12, %v336_v17 }
  0x8c   : > { %v290_v43 = vmul.f32 %v636_v24, %v289_v37 }
  0x8d   : > { %v338_v27 = vmul.f32 %v337_v26, %v331_v18 }
  0x8e   : > { %v291_v46 = vmul.f32 %v290_v43, %v275_v22 }
  0x8f   : > { %v339_v28 = vsel %vm329_vm1, %v338_v27, %v327_v2 }
  0x90   : > { %v340_v29 = vmul.f32 %v339_v28, %v339_v28 }
  0x92   : > { %v341_v30 = vmul.f32 0.080537446, %v340_v29 }
  0x94   : > { %v559_v31 = vadd.f32 -0.13877685, %v341_v30 }
  0x96   : > { %v343_v20 = vmul.f32 %v559_v31, %v340_v29 }
  0x98   : > { %v344_v23 = vadd.f32 0.19977711, %v343_v20 }
  0x9a   : > { %v345_v25 = vmul.f32 %v344_v23, %v340_v29 }
  0x9c   : > { %v560_v33 = vadd.f32 -0.3333295, %v345_v25 }
  0x9e   : > { %v347_v34 = vmul.f32 %v560_v33, %v340_v29 }
  0xa0   : > { %v348_v38 = vmul.f32 %v347_v34, %v339_v28 }
  0xa2   : > { %v349_v40 = vadd.f32 %v348_v38, %v339_v28 }
  0xa4   : > { %v352_v44 = vadd.f32 %v351_v39, %v349_v40 }
  0xa6   : > { %v353_v45 = vmul.f32 %v352_v44, %v326_v42 }
  0xa8   : > { %v354_v47 = vmul.f32 0.40528473, %v353_v45 }
  0xaa   : > { %v355_v48 = vmul.f32 %v354_v47, %v353_v45 }
  0xac   : > { %v356_v49 = vsub.f32 %v355_v48, %v291_v46 }
  0xae   : > { %v357_v50 = vadd.f32 1.0000001, %v356_v49 }
  0xb0   : > { %637 = vrcp.f32 %v357_v50 }
  0xba   : > { %v638_v51 = vpop.eup %637 }
  0xbb   : > { %v359_v52 = vmul.f32 %v638_v51, %v357_v50 }
  0xbd   : > { %v360_v53 = vsub.f32 2.0, %v359_v52 }
  0xbf   : > { %v361_v54 = vmul.f32 %v638_v51, %v360_v53 }
  0xc1   : > { %v362_v55 = vmul.f32 %v361_v54, %v355_v48 }
  0xc3   : > { %v368_v56 = vmul.f32 %v362_v55, %v355_v48 }
  0xc5   : > { %v369_v57 = vadd.f32 %v368_v56, %v367_v5 }
  0xc7   : > { %v370_v58 = vsub.f32 %v291_v46, %v369_v57 }
  0xc9   : > { %v561_v59 = vclamps-f32 %v370_v58, 1.0 }
  0xcb   : > { %373 = vst [vmem:[%s230_s10] sm:$0xff] %v561_v59  ;;  %v374_v60 = vsub.f32 1.0, %v561_v59 }
  0xcc   : > { %712 = shalt.err (!%p709_p11)
}
  0xcd   : > { %s713_s9 = scalar_lea.hbm %s1019_s28, 128  ;;  %s717_s20 = scalar_lea.hbm %s1092_s2, 512 }
  0xce   : > { %p714_p3 = scmp.ne.s32.totalorder %s1019_s28, %s713_s9  ;;  %p718_p2 = scmp.lt.u32.totalorder %s1019_s28, %s1092_s2 }
  0xcf   : > { %p719_p4 = scmp.lt.u32.totalorder %s717_s20, %s713_s9  ;;  %p721_p12 = scmp.lt.u32.totalorder %s713_s9, %s1019_s28 }
  0xd0   : > { %p715_p8 = pnand %p714_p3, %p1104_p1 }
  0xd1   : > { %p720_p6 = por %p719_p4, %p718_p2 }
  0xd2   : > { %p716_p0 = pneg %p715_p8 }
  0xd3   : > { %p722_p13 = por %p721_p12, %p720_p6 }
  0xd5   : > { %p723_p9 = pnand %p722_p13, %p716_p0 }
  0xd7   : > { %726 = shalt.err (!%p723_p9)
}
  0xd8   : > { %572 = dma.vmem_to_hbm [thread:$0]  (%p1104_p1), %s1014_s11, 128, %s1019_s28, %s378_s8   ;;  %376 = vst [vmem:[%s1011_s22] sm:$0xff] %v374_v60 }
  0xd9   : > { %s383_s16 = scalar_lea.sflag [#allocation9], %s993_s6  ;;  %s727_s29 = scalar_lea.vmem %s1021_s30, 128 }
  0xda   : > { %p728_p5 = scmp.ne.s32.totalorder %s1021_s30, %s727_s29  ;;  %s811_s5 = smov [#allocation8]  }
  0xdb   : > { %s731_s17 = sshll.u32 %s811_s5, 4  ;;  %s732_s17 = int_to_ptr.vmem [resolvable:$false] %s731_s17 }
  0xdc   : > { %p729_p7 = pnand %p728_p5, %p1104_p1  ;;  %s733_s7 = scalar_lea.vmem %s732_s17, 256 }
  0xdd   : > { %p734_p11 = scmp.lt.s32.totalorder %s1021_s30, %s732_s17  ;;  %p735_p3 = scmp.lt.s32.totalorder %s733_s7, %s727_s29 }
  0xde   : > { %p730_p10 = pneg %p729_p7 }
  0xdf   : > { %p736_p8 = por %p735_p3, %p734_p11 }
  0xe1   : > { %p737_p0 = pnand %p736_p8, %p730_p10 }
  0xe3   : > { %740 = shalt.err (!%p737_p0)
}
  0xe4   : > { %s741_s6 = scalar_lea.hbm %s1026_s27, 128  ;;  %s745_s28 = scalar_lea.hbm %s1093_s3, 512 }
  0xe5   : > { %p742_p2 = scmp.ne.s32.totalorder %s1026_s27, %s741_s6  ;;  %p746_p12 = scmp.lt.u32.totalorder %s1026_s27, %s1093_s3 }
  0xe6   : > { %p747_p13 = scmp.lt.u32.totalorder %s745_s28, %s741_s6  ;;  %p749_p5 = scmp.lt.u32.totalorder %s741_s6, %s1026_s27 }
  0xe7   : > { %p743_p4 = pnand %p742_p2, %p1104_p1 }
  0xe8   : > { %p748_p9 = por %p747_p13, %p746_p12 }
  0xe9   : > { %p744_p6 = pneg %p743_p4 }
  0xea   : > { %p750_p7 = por %p749_p5, %p748_p9 }
  0xec   : > { %p751_p10 = pnand %p750_p7, %p744_p6 }
  0xee   : > { %754 = shalt.err (!%p751_p10)
}
  0xef   : > { %573 = dma.vmem_to_hbm [thread:$0]  (%p1104_p1), %s1021_s30, 128, %s1026_s27, %s383_s16  }
  0xf0 PF: > { %p591_p11 = scmp.ge.s32.totalorder %s801_s15, 2  ;;  %s421_s9 = sand.u32 1, %s789_s12  }
  0xf1   : > { %p1105_p3 = scmp.ne.s32.totalorder %s1099_s25, 0  ;;  %s422_s23 = scalar_lea.sflag [#allocation4], %s421_s9 }
  0xf3   : > { %p584_p8 = pnand %p591_p11, %p1105_p3 }
  0xf5   : > { %780 = dma.done.wait (!%p584_p8), %s422_s23, 128  }
  0xf6   : > { %782 = vsyncadd (!%p584_p8), %s422_s23, 4294967168  ;;  %s431_s10 = scalar_lea.sflag [#allocation9], %s421_s9 }
  0xf7   : > { %784 = dma.done.wait (!%p584_p8), %s431_s10, 128  }
  0xf8   : > { %786 = vsyncadd (!%p584_p8), %s431_s10, 4294967168  ;;  %p23_p1 = scmp.ge.s32.totalorder %s857_s18, 6   ;;  %s1106_s12 = smov %s793_s13 }
  0xf9   : > { %s1107_s13 = smov %s797_s14  ;;  %s1108_s14 = smov %s869_s21 }
  0xfa   : > { %s1109_s15 = smov %s857_s18  ;;  %25 = sbr.rel (!%p23_p1) target bundleno = 9 (0x9), region = 109 }
 0x101   :  { %436 = vsyncpa [#allocation3], 1 }
 0x102   :  { %438 = vsyncpa [#allocation3 + $0x1], 1 }
 0x103   :  { %439 = vsyncpa [#allocation6], 1 }
 0x104   :  { %441 = vsyncpa [#allocation6 + $0x1], 1 }
 0x105   :  { %442 = vsyncpa [#allocation4], 1 }
 0x106   :  { %444 = vsyncpa [#allocation4 + $0x1], 1 }
 0x107   :  { %445 = vsyncpa [#allocation9], 1 }
 0x108   :  { %447 = vsyncpa [#allocation9 + $0x1], 1 }

</bundles_post_ra>
